<compile_context>
chip_gen: v6e
topology: v6e:2x2x1
jax: 0.10.0
libtpu: 0.0.40
codegen_flags: <defaults>
</compile_context>

<pallas_src>
import numpy as np
import jax
import jax.numpy as jnp
from jax.experimental import pallas as pl
from jax.experimental.pallas import tpu as pltpu


# ---------------------------------------------------------------------------
# Column (lane) operator: banded blur + 2x decimate block.
# ---------------------------------------------------------------------------
def _banded_col_block(tn: int) -> np.ndarray:
    """(2*tn, tn) banded block: out col j <- 0.25*in[2j-1] + 0.5*in[2j] + 0.25*in[2j+1].

    The 2j-1 term for j == 0 lies outside the tile's input slice (or is the reflect
    column for the very first tile) and is added in the kernel as a rank-1 fix.
    """
    b = np.zeros((2 * tn, tn), dtype=np.float32)
    j = np.arange(tn)
    b[2 * j, j] = 0.5
    b[2 * j + 1, j] = 0.25
    if tn > 1:
        b[2 * j[1:] - 1, j[1:]] = 0.25
    return b


def _lane_tile(w_out: int) -> int:
    """Output-lane tile width for the blocked column matmul (256/128 when possible)."""
    for tn in (256, 128):          # 256 fills the v6e/v7x 2x256^2 MXU (review item 10)
        if w_out >= tn and w_out % tn == 0:
            return tn
    return w_out


# ---------------------------------------------------------------------------
# Fused multi-level kernel.
# ---------------------------------------------------------------------------
def _make_pyramid_kernel(tb, H, W, num_levels, tile_ns, out_dtype, mm_dtype,
                         cast_input, carry_needed):
    def kernel(*refs):
        ops = refs[:num_levels]
        x_ref = refs[num_levels]
        outs = refs[num_levels + 1:2 * num_levels + 1]
        scratch = refs[2 * num_levels + 1:]

        si = 0
        if cast_input:
            # Cast the native-dtype block once into f32 scratch (avoids stride-2
            # sublane reads on packed bf16 data).
            xin = scratch[si]
            si += 1
            xin[...] = x_ref[...].astype(jnp.float32)
            src = xin
        else:
            src = x_ref
        carries = scratch[si:]

        hs, ws = H, W
        for l in range(num_levels):
            ht, w_out = hs // 2, ws // 2
            rows = tb * ht

            # ---- row (sublane) blur + 2x decimate on the VPU -----------------
            even = src[pl.ds(0, rows, stride=2), :]   # source rows 2i   (per plane)
            odd = src[pl.ds(1, rows, stride=2), :]    # source rows 2i+1 (per plane)
            # Row 2i-1 is the previous odd row; the first output row of each plane
            # reflects onto that plane's own first odd row.
            # (jnp.roll kept for guaranteed semantics; narrow (rows,1) mask per review.)
            shifted = jnp.roll(odd, 1, axis=0)
            ridx = jax.lax.broadcasted_iota(jnp.int32, (rows, 1), 0)
            first = (ridx % ht) == 0
            prev = jnp.where(first, odd, shifted)
            rowblur = 0.5 * even + 0.25 * odd + 0.25 * prev          # f32

            # ---- column (lane) blur + 2x decimate: blocked banded matmuls ----
            tn = tile_ns[l]
            n_tiles = w_out // tn
            lane0 = (jax.lax.broadcasted_iota(jnp.int32, (1, tn), 1) == 0
                     ).astype(jnp.float32)
            op_val = ops[l][...]
            for t in range(n_tiles):
                c0 = 2 * t * tn
                blk = rowblur[:, c0:c0 + 2 * tn]
                if mm_dtype == jnp.float32:
                    acc = jnp.dot(blk, op_val,
                                  preferred_element_type=jnp.float32,
                                  precision=jax.lax.Precision.HIGHEST)
                else:  # bf16 MXU fast path (weights 0.5/0.25 are exact in bf16)
                    acc = jnp.dot(blk.astype(mm_dtype), op_val,
                                  preferred_element_type=jnp.float32)
                # rank-1 fix: left neighbour of the tile's first output column
                # (the global reflect column for t == 0).
                cfix = 1 if t == 0 else c0 - 1
                fixcol = rowblur[:, cfix:cfix + 1]
                acc = acc + (0.25 * fixcol) * lane0

                if n_tiles == 1:
                    outs[l][...] = acc.astype(out_dtype)
                    if carry_needed and l + 1 < num_levels:
                        carries[l][...] = acc
                else:
                    outs[l][:, t * tn:(t + 1) * tn] = acc.astype(out_dtype)
                    if carry_needed and l + 1 < num_levels:
                        carries[l][:, t * tn:(t + 1) * tn] = acc

            # Next level reads the f32 result still resident in VMEM.
            if l + 1 < num_levels:
                src = carries[l] if carry_needed else outs[l]
            hs, ws = ht, w_out

    return kernel


# ---------------------------------------------------------------------------
# Sizing helpers.
# ---------------------------------------------------------------------------
def _vmem_budget_and_limit():
    """(tb sizing budget, vmem_limit_bytes), per TPU generation."""
    kind = ""
    try:
        kind = jax.devices()[0].device_kind.lower()
    except Exception:
        pass
    if ("v5" in kind) or ("v6" in kind):
        return 72 << 20, 96 << 20      # 128 MiB physical VMEM on v5e / v6e
    return 36 << 20, 48 << 20          # v7x (64 MiB / TC) and unknown: conservative


def _num_pallas_levels(H, W, num_levels):
    """Levels computed inside the fused kernel (>=128-lane outputs, always >= 1)."""
    if num_levels <= 0 or H < 2 or W < 2 or H % 2 or W % 2:
        return 0
    lv = 0
    for l in range(num_levels):
        s = 1 << (l + 1)
        if H % s == 0 and W % s == 0 and (W >> (l + 1)) >= 128:
            lv += 1
        else:
            break
    return max(lv, 1)   # always run at least one level through the kernel


def _select_tb(NC, H, W, in_bytes, out_bytes, pallas_levels, budget_bytes,
               carry_needed, cast_input):
    h_min = H >> pallas_levels
    sum_out = sum((H >> (l + 1)) * (W >> (l + 1)) for l in range(pallas_levels))
    per_plane = (2 * H * W * in_bytes                 # double-buffered input block
                 + (H * W * 4 if cast_input else 0)   # f32 cast-in scratch
                 + 3 * (H // 2) * W * 4               # even/odd/prev/rowblur temps
                 + 2 * sum_out * out_bytes            # double-buffered output blocks
                 + (sum_out * 4 if carry_needed else 0))  # f32 inter-level carry
    per_plane = max(per_plane, 1)
    tb_budget = max(1, budget_bytes // per_plane)
    if NC >= 4:
        cap = NC // 4      # >= 4 grid steps: pipelining + v7x dual-core sharding
    elif NC >= 2:
        cap = NC // 2      # >= 2 grid steps
    else:
        cap = 1

    def legal(tb):
        return NC % tb == 0 and (tb == NC or (tb * h_min) % 8 == 0)

    hi = max(1, min(NC, tb_budget, cap))
    for tb in range(hi, 0, -1):
        if legal(tb):
            return tb
    # TODO(synk): no budget/grid-friendly tile exists (e.g. odd NC with h_min not a
    # multiple of 8); fall back to the smallest legal block even if it shrinks the
    # grid or exceeds the sizing budget.
    for tb in range(hi + 1, NC + 1):
        if legal(tb):
            return tb
    return 1


# ---------------------------------------------------------------------------
# Pallas pyramid driver.
# ---------------------------------------------------------------------------
def _pallas_pyramid(x, num_levels, io_dtype, use_bf16_matmul):
    N, C, H, W = x.shape
    NC = N * C
    x2d = x.reshape(NC * H, W)                    # native dtype through HBM
    in_dtype = x2d.dtype
    mm_dtype = jnp.bfloat16 if use_bf16_matmul else jnp.float32
    cast_input = in_dtype != jnp.float32
    carry_needed = (io_dtype != jnp.float32) and num_levels > 1

    budget, vmem_limit = _vmem_budget_and_limit()
    in_bytes = np.dtype(in_dtype).itemsize
    out_bytes = np.dtype(io_dtype).itemsize
    tb = _select_tb(NC, H, W, in_bytes, out_bytes, num_levels, budget,
                    carry_needed, cast_input)

    tile_ns = [_lane_tile(W >> (l + 1)) for l in range(num_levels)]
    ops = [jnp.asarray(_banded_col_block(tn), dtype=mm_dtype) for tn in tile_ns]

    out_shape = tuple(
        jax.ShapeDtypeStruct((NC * (H >> (l + 1)), W >> (l + 1)), io_dtype)
        for l in range(num_levels))

    in_specs = [pl.BlockSpec(op.shape, lambda i: (0, 0)) for op in ops]
    in_specs.append(pl.BlockSpec((tb * H, W), lambda i: (i, 0)))
    out_specs = tuple(
        pl.BlockSpec((tb * (H >> (l + 1)), W >> (l + 1)), lambda i: (i, 0))
        for l in range(num_levels))

    scratch_shapes = []
    if cast_input:
        scratch_shapes.append(pltpu.VMEM((tb * H, W), jnp.float32))
    if carry_needed:
        for l in range(num_levels - 1):
            scratch_shapes.append(
                pltpu.VMEM((tb * (H >> (l + 1)), W >> (l + 1)), jnp.float32))

    kernel = _make_pyramid_kernel(tb, H, W, num_levels, tile_ns, io_dtype,
                                  mm_dtype, cast_input, carry_needed)

    outs = pl.pallas_call(
        kernel,
        out_shape=out_shape,
        grid_spec=pltpu.PrefetchScalarGridSpec(
            num_scalar_prefetch=0,
            grid=(NC // tb,),
            in_specs=in_specs,
            out_specs=out_specs,
            scratch_shapes=scratch_shapes,
        ),
        compiler_params=pltpu.CompilerParams(
            dimension_semantics=("parallel",),
            vmem_limit_bytes=vmem_limit,
        ),
    )(*ops, x2d)
    if not isinstance(outs, (tuple, list)):
        outs = (outs,)

    return [outs[l].reshape(N, C, H >> (l + 1), W >> (l + 1))
            for l in range(num_levels)]


def _jax_blur_down(x):
    """Plain-XLA reflect-pad, separable [1,2,1]/4 blur, 0::2 decimate (coarse tail)."""
    xp = jnp.pad(x, ((0, 0), (0, 0), (1, 1), (1, 1)), mode='reflect')
    b = 0.25 * xp[:, :, :-2, :] + 0.5 * xp[:, :, 1:-1, :] + 0.25 * xp[:, :, 2:, :]
    b = 0.25 * b[:, :, :, :-2] + 0.5 * b[:, :, :, 1:-1] + 0.25 * b[:, :, :, 2:]
    return b[:, :, 0::2, 0::2].astype(x.dtype)


def gaussian_pyramid_levels(x, num_levels, *, use_bf16_matmul=False):
    """Returns [down1, ..., down_num_levels]; down_l has shape (N, C, H/2^l, W/2^l)."""
    if num_levels <= 0:
        return []
    if jnp.issubdtype(x.dtype, jnp.floating):
        io_dtype = x.dtype
    else:
        io_dtype = jnp.float32          # integer inputs: compute & return f32
        x = x.astype(jnp.float32)

    pallas_levels = min(_num_pallas_levels(x.shape[2], x.shape[3], num_levels),
                        num_levels)

    levels = []
    cur4d = x
    if pallas_levels > 0:
        outs = _pallas_pyramid(x, pallas_levels, io_dtype, use_bf16_matmul)
        levels.extend(outs)
        cur4d = outs[-1]
    # TODO(synk): odd H/W (PyTorch's 0::2 ceil behaviour) is handled by the plain-JAX
    # path only; the fused Pallas kernel requires even dims at every level it computes.
    # Coarse levels narrower than 128 lanes are cheap; compute them with plain XLA
    # outside the pipelined kernel (avoids masked sub-128-lane stores, review item 9).
    for _ in range(pallas_levels, num_levels):
        cur4d = _jax_blur_down(cur4d)
        levels.append(cur4d)
    return levels


class ImagePyramidModule:
    """JAX/Pallas port of the PyTorch ImagePyramidModule (Gaussian blur + 2x decimate).

    The GaussianBlurModule is fused with the decimation inside the Pallas kernel
    (the pyramid forward never needs the un-decimated blur).
    """

    def __init__(self, channels, start_level, end_level, device=None,
                 dtype=jnp.float32, use_bf16_matmul=False):
        self.channels = channels        # kept for API parity (blur identical per channel)
        self.start_level = start_level
        self.end_level = end_level
        self.dtype = dtype
        self.use_bf16_matmul = use_bf16_matmul

    def __call__(self, x):
        num_down = self.end_level - 1
        levels = gaussian_pyramid_levels(
            x, num_down, use_bf16_matmul=self.use_bf16_matmul)
        x_levels = [x] + levels
        pyr = []
        for i in range(num_down):
            if i >= self.start_level:
                pyr.insert(0, x_levels[i])
        pyr.insert(0, x_levels[num_down])
        return pyr


# -------------------- pure-JAX reference for validation --------------------
def _ref_blur_down(x):
    xf = x.astype(jnp.float32)
    xp = jnp.pad(xf, ((0, 0), (0, 0), (1, 1), (1, 1)), mode='reflect')
    b = 0.25 * xp[:, :, :-2, :] + 0.5 * xp[:, :, 1:-1, :] + 0.25 * xp[:, :, 2:, :]
    b = 0.25 * b[:, :, :, :-2] + 0.5 * b[:, :, :, 1:-1] + 0.25 * b[:, :, :, 2:]
    return b[:, :, 0::2, 0::2]


if __name__ == "__main__":
    key = jax.random.PRNGKey(0)

    # ---- small case: (2, 4, 16, 16), full pyramid ------------------------------
    N, C, H, W = 2, 4, 16, 16
    x = jax.random.normal(key, (N, C, H, W), dtype=jnp.float32)

    module = ImagePyramidModule(channels=C, start_level=0, end_level=3)
    pyr = [jax.block_until_ready(p) for p in module(x)]
    assert len(pyr) == 3
    assert pyr[2].shape == (N, C, 16, 16)
    assert pyr[1].shape == (N, C, 8, 8)
    assert pyr[0].shape == (N, C, 4, 4)
    assert jnp.allclose(pyr[2], x)

    lvl1_ref = _ref_blur_down(x)
    lvl0_ref = _ref_blur_down(lvl1_ref)
    assert jnp.allclose(pyr[1], lvl1_ref, atol=1e-5, rtol=1e-5)
    assert jnp.allclose(pyr[0], lvl0_ref, atol=1e-5, rtol=1e-5)

    # start_level bookkeeping (finest level excluded).
    module2 = ImagePyramidModule(channels=C, start_level=1, end_level=3)
    pyr2 = [jax.block_until_ready(p) for p in module2(x)]
    assert len(pyr2) == 2
    assert jnp.allclose(pyr2[1], lvl1_ref, atol=1e-5, rtol=1e-5)
    assert jnp.allclose(pyr2[0], lvl0_ref, atol=1e-5, rtol=1e-5)

    # ---- wider case: exercises lane-tiled (blocked) column matmuls + chaining --
    Nw, Cw, Hw, Ww = 1, 2, 32, 1024
    xw = jax.random.normal(jax.random.PRNGKey(0), (Nw, Cw, Hw, Ww), dtype=jnp.float32)
    module_w = ImagePyramidModule(channels=Cw, start_level=0, end_level=3)
    pyr_w = [jax.block_until_ready(p) for p in module_w(xw)]
    w1_ref = _ref_blur_down(xw)
    w0_ref = _ref_blur_down(w1_ref)
    assert pyr_w[1].shape == (Nw, Cw, 16, 512)
    assert pyr_w[0].shape == (Nw, Cw, 8, 256)
    assert jnp.allclose(pyr_w[1], w1_ref, atol=1e-4, rtol=1e-4)
    assert jnp.allclose(pyr_w[0], w0_ref, atol=1e-4, rtol=1e-4)

    # ---- native bf16 I/O path (no f32 HBM round-trips) -------------------------
    xbf = xw.astype(jnp.bfloat16)
    pyr_bf = [jax.block_until_ready(p) for p in module_w(xbf)]
    assert pyr_bf[1].dtype == jnp.bfloat16 and pyr_bf[0].dtype == jnp.bfloat16
    b1_ref = _ref_blur_down(xbf)
    b0_ref = _ref_blur_down(b1_ref)
    assert jnp.allclose(pyr_bf[1].astype(jnp.float32), b1_ref, atol=5e-2, rtol=5e-2)
    assert jnp.allclose(pyr_bf[0].astype(jnp.float32), b0_ref, atol=5e-2, rtol=5e-2)

    # ---- bf16-MXU precision flag (v5e fast path), looser tolerance -------------
    module_fast = ImagePyramidModule(channels=C, start_level=0, end_level=3,
                                     use_bf16_matmul=True)
    pyr_fast = [jax.block_until_ready(p) for p in module_fast(x)]
    assert jnp.allclose(pyr_fast[1], lvl1_ref, atol=5e-2, rtol=5e-2)
    assert jnp.allclose(pyr_fast[0], lvl0_ref, atol=5e-2, rtol=5e-2)

    print("KERNEL_OK")
</pallas_src>

<mosaic_0001>
module attributes {stable_mosaic.version = 11 : i64} {
  func.func @kernel(%arg0: i32, %arg1: memref<16x8xf32, #tpu.memory_space<vmem>>, %arg2: memref<32x16xf32, #tpu.memory_space<vmem>>, %arg3: memref<16x8xf32, #tpu.memory_space<vmem>>) attributes {dimension_semantics = [#tpu.dimension_semantics<parallel>], iteration_bounds = array<i64: 4>, scalar_prefetch = 0 : i64, scratch_operands = 0 : i64, tpu.core_type = #tpu.core_type<tc>, window_params = [{pipeline_mode = #tpu.pipeline_mode<synchronous>, transform_indices = @transform_0, window_bounds = array<i64: 16, 8>}, {transform_indices = @transform_1, window_bounds = array<i64: 32, 16>}, {transform_indices = @transform_2, window_bounds = array<i64: 16, 8>}]} {
    %c0 = arith.constant 0 : index
    %c0_0 = arith.constant 0 : index
    %0 = tpu.strided_load %arg2[%c0, %c0_0] {strides = array<i32: 2, 1>} : memref<32x16xf32, #tpu.memory_space<vmem>>, vector<16x16xf32>
    %c1 = arith.constant 1 : index
    %c0_1 = arith.constant 0 : index
    %1 = tpu.strided_load %arg2[%c1, %c0_1] {strides = array<i32: 2, 1>} : memref<32x16xf32, #tpu.memory_space<vmem>>, vector<16x16xf32>
    %2 = vector.extract_strided_slice %1 {offsets = [15, 0], sizes = [1, 16], strides = [1, 1]} : vector<16x16xf32> to vector<1x16xf32>
    %3 = vector.extract_strided_slice %1 {offsets = [0, 0], sizes = [15, 16], strides = [1, 1]} : vector<16x16xf32> to vector<15x16xf32>
    %4 = tpu.concatenate %2, %3 in 0 : vector<1x16xf32>, vector<15x16xf32> -> vector<16x16xf32>
    %5 = tpu.iota {dimensions = array<i32: 0>} : vector<16x1xi32>
    %c8_i32 = arith.constant 8 : i32
    %c0_i32 = arith.constant 0 : i32
    %6 = arith.cmpi eq, %c8_i32, %c0_i32 : i32
    %c1_i32 = arith.constant 1 : i32
    %7 = arith.select %6, %c1_i32, %c8_i32 : i32
    %8 = vector.broadcast %7 : i32 to vector<16x1xi32>
    %9 = arith.remsi %5, %8 : vector<16x1xi32>
    %c0_i32_2 = arith.constant 0 : i32
    %10 = vector.broadcast %c0_i32_2 : i32 to vector<16x1xi32>
    %11 = arith.cmpi ne, %9, %10 : vector<16x1xi32>
    %c0_i32_3 = arith.constant 0 : i32
    %12 = vector.broadcast %c0_i32_3 : i32 to vector<16x1xi32>
    %13 = arith.cmpi slt, %9, %12 : vector<16x1xi32>
    %c0_i32_4 = arith.constant 0 : i32
    %14 = arith.cmpi slt, %7, %c0_i32_4 : i32
    %15 = vector.broadcast %14 : i1 to vector<16x1xi1>
    %16 = vector.broadcast %15 : vector<16x1xi1> to vector<16x1xi1>
    %17 = arith.xori %13, %16 : vector<16x1xi1>
    %18 = arith.andi %17, %11 : vector<16x1xi1>
    %19 = vector.broadcast %7 : i32 to vector<16x1xi32>
    %20 = arith.addi %9, %19 : vector<16x1xi32>
    %21 = arith.select %18, %20, %9 : vector<16x1xi1>, vector<16x1xi32>
    %c0_i32_5 = arith.constant 0 : i32
    %22 = vector.broadcast %c0_i32_5 : i32 to vector<16x1xi32>
    %23 = arith.cmpi eq, %21, %22 : vector<16x1xi32>
    %24 = vector.shape_cast %23 : vector<16x1xi1> to vector<16x1xi1>
    %25 = vector.broadcast %24 : vector<16x1xi1> to vector<16x16xi1>
    %26 = arith.select %25, %1, %4 : vector<16x16xi1>, vector<16x16xf32>
    %cst = arith.constant 5.000000e-01 : f32
    %27 = vector.broadcast %cst : f32 to vector<16x16xf32>
    %28 = arith.mulf %27, %0 : vector<16x16xf32>
    %cst_6 = arith.constant 2.500000e-01 : f32
    %29 = vector.broadcast %cst_6 : f32 to vector<16x16xf32>
    %30 = arith.mulf %29, %1 : vector<16x16xf32>
    %31 = arith.addf %28, %30 : vector<16x16xf32>
    %cst_7 = arith.constant 2.500000e-01 : f32
    %32 = vector.broadcast %cst_7 : f32 to vector<16x16xf32>
    %33 = arith.mulf %32, %26 : vector<16x16xf32>
    %34 = arith.addf %31, %33 : vector<16x16xf32>
    %35 = tpu.iota {dimensions = array<i32: 1>} : vector<1x8xi32>
    %c0_i32_8 = arith.constant 0 : i32
    %36 = vector.broadcast %c0_i32_8 : i32 to vector<1x8xi32>
    %37 = arith.cmpi eq, %35, %36 : vector<1x8xi32>
    %38 = arith.extui %37 : vector<1x8xi1> to vector<1x8xi32>
    %39 = arith.sitofp %38 : vector<1x8xi32> to vector<1x8xf32>
    %c0_9 = arith.constant 0 : index
    %c0_10 = arith.constant 0 : index
    %40 = vector.load %arg1[%c0_9, %c0_10] : memref<16x8xf32, #tpu.memory_space<vmem>>, vector<16x8xf32>
    %cst_11 = arith.constant dense<0.000000e+00> : vector<16x8xf32>
    %41 = tpu.matmul %34, %40, %cst_11 {dimension_numbers = #tpu.dot_dimension_numbers<[1], [0], [0], [1], [0, 0, 1, 1], [], []>, precision = #tpu.contract_precision<fp32>} : vector<16x16xf32>, vector<16x8xf32>, vector<16x8xf32> -> vector<16x8xf32>
    %42 = vector.extract_strided_slice %34 {offsets = [0, 1], sizes = [16, 1], strides = [1, 1]} : vector<16x16xf32> to vector<16x1xf32>
    %cst_12 = arith.constant 2.500000e-01 : f32
    %43 = vector.broadcast %cst_12 : f32 to vector<16x1xf32>
    %44 = arith.mulf %43, %42 : vector<16x1xf32>
    %45 = vector.broadcast %44 : vector<16x1xf32> to vector<16x8xf32>
    %46 = vector.broadcast %39 : vector<1x8xf32> to vector<16x8xf32>
    %47 = arith.mulf %45, %46 : vector<16x8xf32>
    %48 = arith.addf %41, %47 : vector<16x8xf32>
    %c0_13 = arith.constant 0 : index
    %c0_14 = arith.constant 0 : index
    %49 = vector.load %arg3[%c0_13, %c0_14] : memref<16x8xf32, #tpu.memory_space<vmem>>, vector<16x8xf32>
    tpu.vector_store %arg3[%c0_13, %c0_14], %48 {strides = array<i32>} : memref<16x8xf32, #tpu.memory_space<vmem>>, vector<16x8xf32>,
    return
  }
  func.func @transform_0(%arg0: i32) -> (i32, i32) {
    %c0_i32 = arith.constant 0 : i32
    %c0_i32_0 = arith.constant 0 : i32
    %c0_i32_1 = arith.constant 0 : i32
    return %c0_i32, %c0_i32_0 : i32, i32
  }
  func.func @transform_1(%arg0: i32) -> (i32, i32) {
    %c0_i32 = arith.constant 0 : i32
    %c0_i32_0 = arith.constant 0 : i32
    return %arg0, %c0_i32 : i32, i32
  }
  func.func @transform_2(%arg0: i32) -> (i32, i32) {
    %c0_i32 = arith.constant 0 : i32
    %c0_i32_0 = arith.constant 0 : i32
    return %arg0, %c0_i32 : i32, i32
  }
}

</mosaic_0001>

<bundles_post_ra>
// kernel: tpu_custom_call.1
= control target key start
LH: loop header
LB: loop body
LE: loop exit
PB: predicated region body
PF: predicated region fallthrough
CT: control target
= control target key end

     0   :  { %s915_s9 = smov 0   ;;  %s998_s0 = inlined_call_operand.vmem [shape: f32[16,8], index: 0, kind: input, shape index: {}]   ;;  %s999_s1 = inlined_call_operand.vmem [shape: f32[128,16], index: 1, kind: input, shape index: {}]   ;;  %s1000_s2 = inlined_call_operand.vmem [shape: f32[64,8], index: 2, kind: output, shape index: {}]  }
   0x1 LB: > { %s798_s10 = sadd.s32 4294967295, %s896_s9   ;;  %p802_p0 = scmp.ge.s32.totalorder %s896_s9, 1  ;;  %s896_s9 = sphi %s915_s9, %s12_s9  }
   0x2   : > { %p113_p1 = scmp.lt.s32.totalorder %s896_s9, 5 }
   0x4   : > { %p114_p2 = pnand %p802_p0, %p113_p1 }
   0x5   : > { %s803_s15 = sshll.u32 (!%p114_p2), %s798_s10, 2  ;;  %s805_s20 = sshll.u32 (!%p114_p2), %s798_s10, 1 }
   0x6   : > { %117 = sbr.rel (%p114_p2) target bundleno = 244 (0xf4), region = 28  ;;  %p136_p3 = scmp.lt.s32.totalorder (!%p114_p2), %s803_s15, 15 }
   0x7   : > { %p142_p4 = scmp.lt.s32.totalorder (!%p114_p2), %s805_s20, 7 }
   0xb   : > { %v215_v0 = vld [vmem:[%s998_s0 + $0x8] sm:$0xff]  ;;  %v214_v1 = vld [vmem:[%s998_s0] sm:$0xff]  ;;  %v164_v2 = vlaneseq  ;;  %v898_v5 = vmov 1   ;;  %s1006_s15 = smov (!%p136_p3, %s803_s15), 15  ;;  %vm158_vm0 = vcmask 1040384   ;;  %vm230_vm3 = vcmask 130048  }
   0xc   : > { %v931_v3 = vand.u32 4294901760, %v215_v0  ;;  %v933_v4 = vand.u32 4294901760, %v214_v1  ;;  %889 = vset.pattern.permute.xlu0 %v898_v5  ;;  %s804_s16 = sshll.u32 %s1006_s15, 3  ;;  %v899_v57 = vmov 0.0   ;;  %s1008_s20 = smov (!%p142_p4, %s805_s20), 7  ;;  %vm739_vm5 = vcmask 64512  }
   0xd   : > { %v165_v6 = vshrl.u32 %v164_v2, 7  ;;  %s139_s19 = scalar_lea.vmem %s999_s1, %s804_s16  ;;  %v210_v54 = vand.u32 127, %v164_v2  ;;  %s806_s21 = sshll.u32 %s1008_s20, 3 }
   0xe   : > { %837 = vmatprep.subr.mxu0 %v931_v3  ;;  %v938_v7 = vsub.f32 %v215_v0, %v931_v3  ;;  %v941_v8 = vsub.f32 %v214_v1, %v933_v4  ;;  %v147_v17 = vld [vmem:[%s139_s19] ss:$2 sm:$0xff]  ;;  %v807_v18 = vld [vmem:[%s139_s19 + $0x10] ss:$2 sm:$0xff]  ;;  %v808_v19 = vld [vmem:[%s139_s19 + $0x1] ss:$2 sm:$0xff]  ;;  %s145_s24 = scalar_lea.vmem %s1000_s2, %s806_s21 }
   0xf   : > { %838 = vmatpush3.msra.mxu0 %v931_v3  ;;  %v166_v9 = vadd.s32 8, %v165_v6  ;;  %v171_v10 = vand.u32 7, %v165_v6  ;;  %v809_v20 = vld [vmem:[%s139_s19 + $0x11] ss:$2 sm:$0xff]  ;;  %v159_v21 = vrot.slane %v808_v19, 7  ;;  %v199_v23 = vmul.f32 0.5, %v147_v17 }
  0x10   : > { %v945_v11 = vand.u32 4294901760, %v938_v7  ;;  %839 = vmatprep.subr.mxu0 %v933_v4  ;;  %v949_v12 = vand.u32 4294901760, %v941_v8  ;;  %v200_v24 = vmul.f32 0.5, %v807_v18  ;;  %v155_v27 = vrot.slane %v809_v20, 7 }
  0x11   : > { %840 = vmatpush3.msra.mxu0 %v933_v4  ;;  %v178_v13 = vand.u32 7, %v166_v9  ;;  %vm955_vm1 = vcmp.eq.s32.totalorder %v171_v10, 0  ;;  %v201_v28 = vmul.f32 0.25, %v808_v19  ;;  %v202_v29 = vmul.f32 0.25, %v809_v20 }
  0x12   : > { %v356_v15 = vsub.f32 %v938_v7, %v945_v11  ;;  %v363_v16 = vsub.f32 %v941_v8, %v949_v12  ;;  %851 = vmatprep.subr.mxu0 %v938_v7  ;;  %v160_v30 = vsel %vm158_vm0, %v159_v21, %v155_v27  ;;  %v163_v31 = vsel %vm158_vm0, %v155_v27, %v159_v21 }
  0x13   : > { %vm964_vm2 = vcmp.eq.s32.totalorder %v178_v13, 0  ;;  %v203_v32 = vadd.f32 %v201_v28, %v199_v23  ;;  %v197_v33 = vsel %vm955_vm1, %v808_v19, %v163_v31  ;;  %v204_v35 = vadd.f32 %v202_v29, %v200_v24 }
  0x14   : > { %v357_v25 = vand.u32 4294901760, %v356_v15  ;;  %v364_v26 = vand.u32 4294901760, %v363_v16  ;;  %v198_v34 = vsel %vm964_vm2, %v809_v20, %v160_v30  ;;  %v205_v36 = vmul.f32 0.25, %v197_v33 }
  0x15   : > { %v206_v37 = vmul.f32 0.25, %v198_v34  ;;  %vm211_vm4 = vcmp.eq.s32.totalorder %v210_v54, 0 }
  0x16   : > { %844 = vmatprep.subr.mxu1 %v357_v25  ;;  %v207_v38 = vadd.f32 %v205_v36, %v203_v32  ;;  %v810_v58 = vsel %vm211_vm4, 1.0, %v899_v57 }
  0x17   : > { %845 = vmatpush3.msra.mxu1 %v357_v25  ;;  %v208_v39 = vadd.f32 %v206_v37, %v204_v35 }
  0x18   : > { %846 = vmatprep.subr.mxu1 %v364_v26  ;;  %v232_v40 = vsel %vm230_vm3, %v207_v38, 0  ;;  %v216_v42 = vmul.f32 0.25, %v207_v38 }
  0x19   : > { %847 = vmatpush3.msra.mxu1 %v364_v26  ;;  %v235_v41 = vsel %vm230_vm3, %v208_v39, 0  ;;  %v304_v43 = vand.u32 4294901760, %v232_v40  ;;  %v217_v45 = vmul.f32 0.25, %v208_v39 }
  0x1a   : > { %858 = vmatprep.subr.mxu1 %v931_v3  ;;  %v314_v44 = vand.u32 4294901760, %v235_v41  ;;  %220 = vperm.xlu0 %889, %v216_v42  }
  0x1b   : > { %v305_v46 = vsub.f32 %v232_v40, %v304_v43  ;;  %848 = vmatprep.mubr.f32.mxu1 %v304_v43 }
  0x1c   : > { %v315_v47 = vsub.f32 %v235_v41, %v314_v44  ;;  %849 = vmatmul.mubr.f32.vlgmr.msra.gmra.mxu1 %v314_v44 }
  0x1d   : > { %v306_v48 = vand.u32 4294901760, %v305_v46  ;;  %859 = vmatpush3.msra.mxu1 %v931_v3 }
  0x1e   : > { %v316_v49 = vand.u32 4294901760, %v315_v47  ;;  %860 = vmatprep.subr.mxu1 %v933_v4  ;;  %225 = vperm.xlu0 %889, %v217_v45  }
  0x1f   : > { %v307_v50 = vsub.f32 %v305_v46, %v306_v48  ;;  %861 = vmatpush3.msra.mxu1 %v933_v4  ;;  %862 = vmatprep.mubr.f32.mxu1 %v306_v48 }
  0x20   : > { %v317_v51 = vsub.f32 %v315_v47, %v316_v49  ;;  %863 = vmatmul.mubr.f32.vlgmr.msra.gmra.mxu1 %v316_v49  ;;  %872 = vmatprep.subr.mxu1 %v931_v3 }
  0x21   : > { %v308_v52 = vand.u32 4294901760, %v307_v50  ;;  %873 = vmatpush3.msra.mxu1 %v931_v3  ;;  %876 = vmatprep.mubr.f32.mxu1 %v304_v43 }
  0x22   : > { %v318_v53 = vand.u32 4294901760, %v317_v51  ;;  %874 = vmatprep.subr.mxu1 %v933_v4 }
  0x23   : > { %841 = vmatprep.mubr.f32.mxu0 %v308_v52  ;;  %875 = vmatpush3.msra.mxu1 %v933_v4 }
  0x24   : > { %842 = vmatmul.mubr.f32.vlgmr.msra.gmra.mxu0 %v318_v53  ;;  %877 = vmatmul.mubr.f32.vlgmr.msra.gmra.mxu1 %v314_v44 }
  0x25   : > { %852 = vmatpush3.msra.mxu0 %v938_v7  ;;  %855 = vmatprep.mubr.f32.mxu0 %v305_v46 }
  0x26   : > { %853 = vmatprep.subr.mxu0 %v941_v8 }
  0x27   : > { %854 = vmatpush3.msra.mxu0 %v941_v8 }
  0x28   : > { %865 = vmatprep.subr.mxu0 %v945_v11  ;;  %856 = vmatmul.mubr.f32.vlgmr.msra.gmra.mxu0 %v315_v47 }
  0x29   : > { %866 = vmatpush3.msra.mxu0 %v945_v11  ;;  %869 = vmatprep.mubr.f32.mxu0 %v304_v43 }
  0x2a   : > { %867 = vmatprep.subr.mxu0 %v949_v12 }
  0x2b   : > { %868 = vmatpush3.msra.mxu0 %v949_v12 }
  0x2c   : > { %870 = vmatmul.mubr.f32.vlgmr.msra.gmra.mxu0 %v314_v44 }
  0x95   : > { %v221_v55 = vpop.permute.xlu0 %220 }
  0x96   : > { %v228_v0 = vmul.f32 %v810_v58, %v221_v55 }
  0x99   : > { %v226_v59 = vpop.permute.xlu0 %225 }
  0x9a   : > { %v229_v61 = vmul.f32 %v810_v58, %v226_v59 }
  0xdc   : > { %v850_v56 = vpop.f32.mrf.mxu1 }
  0xde   : > { %v401_v60 = vpop.f32.mrf.mxu1 }
  0xe0   : > { %v864_v63 = vpop.f32.mrf.mxu1 }
  0xe2   : > { %v565_v2 = vpop.f32.mrf.mxu1 }
  0xe4   : > { %v843_v62 = vpop.f32.mrf.mxu0  ;;  %v878_v13 = vpop.f32.mrf.mxu1 }
  0xe5   : > { %v321_v1 = vadd.f32 %v843_v62, %v229_v61 }
  0xe6   : > { %v310_v3 = vpop.f32.mrf.mxu0  ;;  %v729_v18 = vpop.f32.mrf.mxu1 }
  0xe7   : > { %v408_v4 = vadd.f32 %v850_v56, %v321_v1  ;;  %v311_v5 = vadd.f32 %v310_v3, %v228_v0 }
  0xe8   : > { %v857_v6 = vpop.f32.mrf.mxu0 }
  0xe9   : > { %v402_v7 = vadd.f32 %v401_v60, %v311_v5  ;;  %v491_v8 = vadd.f32 %v857_v6, %v408_v4 }
  0xea   : > { %v483_v9 = vpop.f32.mrf.mxu0 }
  0xeb   : > { %v574_v10 = vadd.f32 %v864_v63, %v491_v8  ;;  %v484_v11 = vadd.f32 %v483_v9, %v402_v7 }
  0xec   : > { %v871_v12 = vpop.f32.mrf.mxu0 }
  0xed   : > { %v566_v14 = vadd.f32 %v565_v2, %v484_v11  ;;  %v657_v15 = vadd.f32 %v871_v12, %v574_v10 }
  0xee   : > { %v650_v16 = vpop.f32.mrf.mxu0 }
  0xef   : > { %v651_v17 = vadd.f32 %v650_v16, %v566_v14  ;;  %v736_v20 = vadd.f32 %v878_v13, %v657_v15 }
  0xf1   : > { %v730_v19 = vadd.f32 %v729_v18, %v651_v17  ;;  %741 = vst.msk [vmem:[%s145_s24 + $0x8] sm:$0xff] %vm739_vm5, %v736_v20 }
  0xf3   : > { %740 = vst.msk [vmem:[%s145_s24] sm:$0xff] %vm739_vm5, %v730_v19 }
  0xf4 PF: > { %s12_s9 = sadd.s32 1, %s896_s9  }
  0xf5   : > { %p9_p5 = scmp.ge.s32.totalorder %s12_s9, 6  }
  0xf7   :  { %11 = sbr.rel (!%p9_p5) target bundleno = 1 (0x1), region = 61 }

</bundles_post_ra>
